<compile_context>
chip_gen: v6e
topology: v6e:2x2x1
jax: 0.10.0
libtpu: 0.0.40
codegen_flags: <defaults>
</compile_context>

<pallas_src>
import math

import jax
import jax.numpy as jnp
from jax.experimental import pallas as pl
from jax.experimental.pallas import tpu as pltpu

OMEGA = 10.0
EPSILON = 2.0
C_CONST = OMEGA - OMEGA * math.log(1.0 + OMEGA / EPSILON)

LANES = 128
SUBLANES = 8

# Per-input, per-step streamed bytes. 4 MiB/buffer -> 2 inputs x 2 pipeline
# buffers = 16 MiB of input VMEM.
TILE_BYTES = 4 * 1024 * 1024

# Request the scoped-VMEM ceiling explicitly: v5e's 16 MiB default would reject
# the double-buffered 8 MiB/step tiles; 40 MiB is under physical VMEM on every
# generation (incl. v7x's 64 MiB per TensorCore).
VMEM_LIMIT_BYTES = 40 * 1024 * 1024

# Leading "parallel" grid axis size: sharded across TensorCores on multi-TC
# chips (v7x has 2 TCs); on 1-TC chips (v5e/v6e) it simply runs serially.
NUM_CORE_SPLITS = 2


def _round_up(x, m):
    return ((x + m - 1) // m) * m


def _cdiv(a, b):
    return (a + b - 1) // b


def _make_wing_kernel(tile_rows, valid_rows_last, needs_mask):
    """tile_rows: multiple of the sublane packing; valid_rows_last: valid rows
    in the globally-last block; needs_mask: static bool (last block partial)."""
    groups = tile_rows // SUBLANES

    def lane_partial_sum(x):
        # (tile_rows,128) -> (groups,8,128) summed over axis 0: pure vreg adds,
        # keeping the accumulator lane-shaped so the only cross-lane reduce is
        # the tiny jnp.sum done once in the wrapper.
        return jnp.sum(x.reshape(groups, SUBLANES, LANES), axis=0)

    def kernel(pred_ref, target_ref, out_ref):
        c = pl.program_id(0)          # core-split axis ("parallel")
        i = pl.program_id(1)          # tile axis ("arbitrary", serial per core)

        @pl.when(i == 0)
        def _():                      # per-core accumulator init
            out_ref[...] = jnp.zeros_like(out_ref)

        d = jnp.abs(target_ref[...].astype(jnp.float32)
                    - pred_ref[...].astype(jnp.float32))
        # Matches torch.log(1 + d/eps); plain log keeps the transcendental on
        # the EUP (log1p may lower to a multi-op VALU polynomial).
        loss = jnp.where(
            d < OMEGA,
            OMEGA * jnp.log(1.0 + d * (1.0 / EPSILON)),
            d - C_CONST,
        )

        if needs_mask:
            # Only the globally-last block is row-partial (undefined VMEM rows
            # beyond the data); every other step takes the cheap unmasked path.
            is_global_last = jnp.logical_and(c == pl.num_programs(0) - 1,
                                             i == pl.num_programs(1) - 1)

            @pl.when(jnp.logical_not(is_global_last))
            def _():
                out_ref[...] += lane_partial_sum(loss)

            @pl.when(is_global_last)
            def _():
                row_ids = jax.lax.broadcasted_iota(jnp.int32, loss.shape, 0)
                out_ref[...] += lane_partial_sum(
                    jnp.where(row_ids < valid_rows_last, loss, 0.0))
        else:
            out_ref[...] += lane_partial_sum(loss)

    return kernel


@jax.jit
def wing_loss(pred, target):
    assert pred.shape == target.shape
    n_elem = pred.size

    itemsize_p = jnp.dtype(pred.dtype).itemsize
    itemsize_t = jnp.dtype(target.dtype).itemsize
    itemsize_max = max(itemsize_p, itemsize_t)
    # Sublane packing of the narrower dtype: 8 rows (f32), 16 (bf16/f16), 32 (int8/fp8).
    pack = max(SUBLANES, 32 // min(itemsize_p, itemsize_t))
    max_tile_rows = (TILE_BYTES // (LANES * itemsize_max)) // pack * pack

    flat_p = jnp.ravel(pred)    # free reshape (no copy)
    flat_t = jnp.ravel(target)

    rows_needed = _cdiv(n_elem, LANES)
    if rows_needed <= max_tile_rows:
        # Small input: one block covering everything; tiny zero-pad so the
        # block is packing-aligned (padded zeros contribute exactly 0).
        tile_rows = max(_round_up(rows_needed, pack), pack)
        padded_len = tile_rows * LANES
        rows = tile_rows
        num_tiles = 1
    else:
        # Large input: lane-pad only (<=127 elems) when n_elem % 128 != 0; the
        # row-partial last block is masked in-kernel on its single step.
        padded_len = _round_up(n_elem, LANES)
        rows = padded_len // LANES
        base_tiles = _cdiv(rows, max_tile_rows)
        splits = NUM_CORE_SPLITS if base_tiles >= NUM_CORE_SPLITS else 1
        total_tiles = _round_up(base_tiles, splits)
        tile_rows = _round_up(_cdiv(rows, total_tiles), pack)
        num_tiles = _cdiv(rows, tile_rows)

    num_cores = (NUM_CORE_SPLITS
                 if (num_tiles >= NUM_CORE_SPLITS
                     and num_tiles % NUM_CORE_SPLITS == 0) else 1)
    tiles_per_core = num_tiles // num_cores
    valid_rows_last = rows - (num_tiles - 1) * tile_rows
    needs_mask = valid_rows_last != tile_rows

    pad = padded_len - n_elem
    if pad:
        # TODO(synk): for very large 128-unaligned inputs this pad is a full
        # HBM copy; a zero-copy path needs 1-D / manual-DMA streaming of the
        # ragged tail. All 128-aligned inputs take the no-pad path above.
        flat_p = jnp.pad(flat_p, (0, pad))
        flat_t = jnp.pad(flat_t, (0, pad))

    p2d = flat_p.reshape(rows, LANES)
    t2d = flat_t.reshape(rows, LANES)

    in_map = lambda c, i: (c * tiles_per_core + i, 0)

    partials = pl.pallas_call(
        _make_wing_kernel(tile_rows, valid_rows_last, needs_mask),
        out_shape=jax.ShapeDtypeStruct((num_cores * SUBLANES, LANES), jnp.float32),
        grid_spec=pltpu.PrefetchScalarGridSpec(
            num_scalar_prefetch=0,
            grid=(num_cores, tiles_per_core),
            in_specs=[
                pl.BlockSpec((tile_rows, LANES), in_map),
                pl.BlockSpec((tile_rows, LANES), in_map),
            ],
            # Per-core lane-dense (8,128) partial-sum slot; resident across the
            # inner "arbitrary" axis (accumulator pattern).
            out_specs=pl.BlockSpec((SUBLANES, LANES), lambda c, i: (c, 0)),
        ),
        compiler_params=pltpu.CompilerParams(
            dimension_semantics=("parallel", "arbitrary"),
            vmem_limit_bytes=VMEM_LIMIT_BYTES,
        ),
        cost_estimate=pl.CostEstimate(
            flops=9 * n_elem,
            transcendentals=n_elem,
            bytes_accessed=n_elem * (itemsize_p + itemsize_t)
                           + num_cores * SUBLANES * LANES * 4,
        ),
    )(p2d, t2d)

    return jnp.sum(partials) / jnp.float32(n_elem)


def wing_loss_ref(pred, target):
    d = jnp.abs(target.astype(jnp.float32) - pred.astype(jnp.float32))
    loss = jnp.where(d < OMEGA, OMEGA * jnp.log(1.0 + d / EPSILON), d - C_CONST)
    return jnp.sum(loss) / jnp.float32(pred.size)


if __name__ == "__main__":
    key = jax.random.PRNGKey(0)

    # Values spread so both Wing branches (log region and linear region) occur.
    cases = [
        ((2, 4, 16, 16), jnp.float32),    # aligned small (single tile, no pad)
        ((3, 5, 7, 11), jnp.float32),     # unaligned small (lane-pad path)
        ((4, 98, 2), jnp.bfloat16),       # narrow dtype, 16-row sublane packing
        ((2, 300, 1920), jnp.float32),    # multi-tile, 2-core split, masked last block
    ]
    for shape, dtype in cases:
        key, k1, k2 = jax.random.split(key, 3)
        pred = (jax.random.normal(k1, shape, dtype=jnp.float32) * 8.0).astype(dtype)
        target = (jax.random.normal(k2, shape, dtype=jnp.float32) * 8.0).astype(dtype)

        out = jax.block_until_ready(wing_loss(pred, target))
        ref = wing_loss_ref(pred, target)
        assert jnp.allclose(out, ref, rtol=2e-4, atol=2e-4), (shape, dtype, out, ref)

    print("KERNEL_OK")
</pallas_src>

<mosaic_0001>
module attributes {stable_mosaic.version = 11 : i64} {
  func.func @kernel(%arg0: i32, %arg1: i32, %arg2: memref<16x128xf32, #tpu.memory_space<vmem>>, %arg3: memref<16x128xf32, #tpu.memory_space<vmem>>, %arg4: memref<8x128xf32, #tpu.memory_space<vmem>>) attributes {dimension_semantics = [#tpu.dimension_semantics<parallel>, #tpu.dimension_semantics<arbitrary>], iteration_bounds = array<i64: 1, 1>, scalar_prefetch = 0 : i64, scratch_operands = 0 : i64, tpu.core_type = #tpu.core_type<tc>, window_params = [{transform_indices = @transform_0, window_bounds = array<i64: 16, 128>}, {transform_indices = @transform_1, window_bounds = array<i64: 16, 128>}, {transform_indices = @transform_2, window_bounds = array<i64: 8, 128>}]} {
    %c0_i32 = arith.constant 0 : i32
    %0 = arith.cmpi eq, %arg1, %c0_i32 : i32
    %1 = arith.extui %0 : i1 to i32
    %c0_i32_0 = arith.constant 0 : i32
    %2 = arith.cmpi ne, %1, %c0_i32_0 : i32
    scf.if %2 {
      %cst_13 = arith.constant 0.000000e+00 : f32
      %24 = vector.broadcast %cst_13 : f32 to vector<8x128xf32>
      %c0_14 = arith.constant 0 : index
      %c0_15 = arith.constant 0 : index
      %25 = vector.load %arg4[%c0_14, %c0_15] : memref<8x128xf32, #tpu.memory_space<vmem>>, vector<8x128xf32>
      tpu.vector_store %arg4[%c0_14, %c0_15], %24 {strides = array<i32>} : memref<8x128xf32, #tpu.memory_space<vmem>>, vector<8x128xf32>,
    } else {
    }
    %c0 = arith.constant 0 : index
    %c0_1 = arith.constant 0 : index
    %3 = vector.load %arg3[%c0, %c0_1] : memref<16x128xf32, #tpu.memory_space<vmem>>, vector<16x128xf32>
    %c0_2 = arith.constant 0 : index
    %c0_3 = arith.constant 0 : index
    %4 = vector.load %arg2[%c0_2, %c0_3] : memref<16x128xf32, #tpu.memory_space<vmem>>, vector<16x128xf32>
    %5 = arith.subf %3, %4 : vector<16x128xf32>
    %6 = math.absf %5 : vector<16x128xf32>
    %cst = arith.constant 1.000000e+01 : f32
    %7 = vector.broadcast %cst : f32 to vector<16x128xf32>
    %8 = arith.cmpf olt, %6, %7 : vector<16x128xf32>
    %cst_4 = arith.constant 5.000000e-01 : f32
    %9 = vector.broadcast %cst_4 : f32 to vector<16x128xf32>
    %10 = arith.mulf %6, %9 : vector<16x128xf32>
    %cst_5 = arith.constant 1.000000e+00 : f32
    %11 = vector.broadcast %cst_5 : f32 to vector<16x128xf32>
    %12 = arith.addf %11, %10 : vector<16x128xf32>
    %13 = math.log %12 : vector<16x128xf32>
    %cst_6 = arith.constant 1.000000e+01 : f32
    %14 = vector.broadcast %cst_6 : f32 to vector<16x128xf32>
    %15 = arith.mulf %14, %13 : vector<16x128xf32>
    %cst_7 = arith.constant -7.9175949 : f32
    %16 = vector.broadcast %cst_7 : f32 to vector<16x128xf32>
    %17 = arith.subf %6, %16 : vector<16x128xf32>
    %18 = arith.select %8, %15, %17 : vector<16x128xi1>, vector<16x128xf32>
    %c0_8 = arith.constant 0 : index
    %c0_9 = arith.constant 0 : index
    %19 = vector.load %arg4[%c0_8, %c0_9] : memref<8x128xf32, #tpu.memory_space<vmem>>, vector<8x128xf32>
    %20 = vector.shape_cast %18 : vector<16x128xf32> to vector<2x8x128xf32>
    %cst_10 = arith.constant dense<0.000000e+00> : vector<8x128xf32>
    %21 = vector.multi_reduction <add>, %20, %cst_10 [0] : vector<2x8x128xf32> to vector<8x128xf32>
    %22 = arith.addf %19, %21 : vector<8x128xf32>
    %c0_11 = arith.constant 0 : index
    %c0_12 = arith.constant 0 : index
    %23 = vector.load %arg4[%c0_11, %c0_12] : memref<8x128xf32, #tpu.memory_space<vmem>>, vector<8x128xf32>
    tpu.vector_store %arg4[%c0_11, %c0_12], %22 {strides = array<i32>} : memref<8x128xf32, #tpu.memory_space<vmem>>, vector<8x128xf32>,
    return
  }
  func.func @transform_0(%arg0: i32, %arg1: i32) -> (i32, i32) {
    %c1_i32 = arith.constant 1 : i32
    %0 = arith.muli %arg0, %c1_i32 : i32
    %1 = arith.addi %0, %arg1 : i32
    %c0_i32 = arith.constant 0 : i32
    %c0_i32_0 = arith.constant 0 : i32
    return %1, %c0_i32 : i32, i32
  }
  func.func @transform_1(%arg0: i32, %arg1: i32) -> (i32, i32) {
    %c1_i32 = arith.constant 1 : i32
    %0 = arith.muli %arg0, %c1_i32 : i32
    %1 = arith.addi %0, %arg1 : i32
    %c0_i32 = arith.constant 0 : i32
    %c0_i32_0 = arith.constant 0 : i32
    return %1, %c0_i32 : i32, i32
  }
  func.func @transform_2(%arg0: i32, %arg1: i32) -> (i32, i32) {
    %c0_i32 = arith.constant 0 : i32
    %c0_i32_0 = arith.constant 0 : i32
    return %arg0, %c0_i32 : i32, i32
  }
}

</mosaic_0001>

<bundles_post_ra>
// kernel: wing_loss.1
= control target key start
LH: loop header
LB: loop body
LE: loop exit
PB: predicated region body
PF: predicated region fallthrough
CT: control target
= control target key end

     0   :  { %s141_s0 = inlined_call_operand.vmem [shape: f32[16,128], index: 0, kind: input, shape index: {}]   ;;  %s142_s1 = inlined_call_operand.vmem [shape: f32[16,128], index: 1, kind: input, shape index: {}]   ;;  %s143_s2 = inlined_call_operand.vmem [shape: f32[8,128], index: 2, kind: output, shape index: {}]  }
   0x1   :  { %v60_v0 = vld [vmem:[%s142_s1] sm:$0xff]  ;;  %v61_v1 = vld [vmem:[%s142_s1 + $0x8] sm:$0xff] }
   0x2   :  { %v62_v2 = vld [vmem:[%s141_s0] sm:$0xff]  ;;  %v63_v3 = vld [vmem:[%s141_s0 + $0x8] sm:$0xff] }
   0x3   :  { %v64_v4 = vsub.f32 %v60_v0, %v62_v2  ;;  %v65_v5 = vsub.f32 %v61_v1, %v63_v3 }
   0x5   :  { %v66_v6 = vand.u32 2147483647, %v64_v4  ;;  %v67_v7 = vand.u32 2147483647, %v65_v5 }
   0x7   :  { %v70_v8 = vmul.f32 0.5, %v66_v6  ;;  %v71_v9 = vmul.f32 0.5, %v67_v7  ;;  %v104_v15 = vadd.f32 7.917595, %v66_v6  ;;  %vm68_vm0 = vcmp.lt.f32.partialorder %v66_v6, 10.0 }
   0x8   :  { %v105_v17 = vadd.f32 7.917595, %v67_v7  ;;  %vm69_vm1 = vcmp.lt.f32.partialorder %v67_v7, 10.0 }
   0x9   :  { %v72_v10 = vadd.f32 1.0, %v70_v8  ;;  %v73_v11 = vadd.f32 1.0, %v71_v9 }
   0xb   :  { %107 = vlog2.f32 %v72_v10 }
   0xc   :  { %109 = vlog2.f32 %v73_v11 }
  0x18   :  { %v108_v12 = vpop.eup %107 }
  0x19   :  { %v110_v13 = vpop.eup %109  ;;  %v75_v14 = vmul.f32 0.6931472, %v108_v12 }
  0x1a   :  { %v77_v16 = vmul.f32 0.6931472, %v110_v13 }
  0x1b   :  { %v78_v18 = vmul.f32 10.0, %v75_v14 }
  0x1c   :  { %v79_v19 = vmul.f32 10.0, %v77_v16 }
  0x1d   :  { %v82_v20 = vsel %vm68_vm0, %v78_v18, %v104_v15 }
  0x1e   :  { %v83_v21 = vsel %vm69_vm1, %v79_v19, %v105_v17 }
  0x1f   :  { %v85_v22 = vadd.f32 %v83_v21, %v82_v20 }
  0x21   :  { %87 = vst [vmem:[%s143_s2] sm:$0xff] %v85_v22 }

</bundles_post_ra>
